<compile_context>
chip_gen: v6e
topology: v6e:2x2x1
jax: 0.10.0
libtpu: 0.0.40
codegen_flags: <defaults>
</compile_context>

<pallas_src>
import functools
import math

import jax
import jax.numpy as jnp
from jax.experimental import pallas as pl
from jax.experimental.pallas import tpu as pltpu

# --- model config (synthetic, small; matches CONFIG.EMB_SIZE-style module) ---
EMB_SIZE = 32          # CONFIG.EMB_SIZE
HIDDEN = EMB_SIZE * 4  # 128
BATCH = 2
SEQ = 8


def ffn_kernel(xt_ref, w1_ref, b1_ref, w2_ref, b2_ref, ot_ref, *, approx_gelu):
    """Fused MLP on one transposed column-tile.

    xt_ref/ot_ref: (E, TM) tile of x^T / y^T, TM on the lane axis (lane-dense).
    w1_ref: (H, E) torch-layout W1;  b1_ref: (H, 1)
    w2_ref: (E, H) torch-layout W2;  b2_ref: (E, 1)
    Both matmuls hit the MXU with f32 accumulation; GELU runs in f32 on the
    VPU/EUP (safe on v5e, which has no bf16 elementwise path).
    """
    xt = xt_ref[...]
    # first projection: h^T = W1 @ x^T  -> (H, TM), f32 accumulate on the MXU
    ht = jnp.dot(w1_ref[...], xt, preferred_element_type=jnp.float32)
    ht = ht + b1_ref[...].astype(jnp.float32)          # (H,1) lane-broadcast
    if approx_gelu:
        # tanh-approximate GELU: transcendental goes to the (otherwise idle) EUP
        c = math.sqrt(2.0 / math.pi)
        ht = 0.5 * ht * (1.0 + jnp.tanh(c * (ht + 0.044715 * ht * ht * ht)))
    else:
        # exact GELU (matches torch.nn.GELU default, approximate='none')
        ht = 0.5 * ht * (1.0 + jax.lax.erf(ht * (1.0 / math.sqrt(2.0))))
    # second projection: y^T = W2 @ h^T -> (E, TM).  Cast h to the weight dtype
    # so a bf16-weight variant feeds the MXU natively (GELU itself stays f32).
    yt = jnp.dot(w2_ref[...], ht.astype(w2_ref.dtype),
                 preferred_element_type=jnp.float32)
    yt = yt + b2_ref[...].astype(jnp.float32)
    ot_ref[...] = yt.astype(ot_ref.dtype)


def _round_up(x, m):
    return (x + m - 1) // m * m


def _cdiv(a, b):
    return -(-a // b)


def _vmem_limit_bytes():
    """Per-generation VMEM budget: ~75% of physical, capped; 32 MiB fallback."""
    try:
        cap = int(pltpu.get_tpu_info().vmem_capacity_bytes)
        return max(min(cap * 3 // 4, 96 << 20), 16 << 20)
    except Exception:
        return 32 << 20


def _pick_tiles(M, E, H, x_itemsize, out_itemsize, resident_bytes, vmem_limit):
    """Choose (tm, n_steps): tm is a multiple of 128 on the lane axis.

    Picks the step count first so padding waste is bounded by ~one 128-lane
    group per step, and forces >=2 steps when M spans more than one lane group
    so both v7x TensorCores get work under dimension_semantics=("parallel",).
    """
    m128 = _round_up(max(M, 1), 128)
    ncols = m128 // 128
    # bytes per streamed lane-column: double-buffered x^T / y^T tiles plus the
    # f32 (H, TM) intermediate held in VMEM/vregs.
    per_col = 2 * E * x_itemsize + 2 * E * out_itemsize + 4 * H
    budget = max(vmem_limit // 2 - resident_bytes, 1 << 20)
    tm_max_cols = max(min(budget // (per_col * 128), 32), 1)   # cap tm at 4096
    n_steps = _cdiv(ncols, tm_max_cols)
    if ncols >= 2:
        n_steps = max(n_steps, 2)
    n_steps = min(n_steps, ncols)
    tm = _cdiv(ncols, n_steps) * 128
    return tm, n_steps


def feed_forward(x, w1, b1, w2, b2, *, tm=None, approx_gelu=False):
    """x: (B, S, E) -> (B, S, E).

    Weights in torch layout: w1 (H, E), b1 (H,), w2 (E, H), b2 (E,).
    x / w1 / w2 may be float32 or bfloat16 (use matching dtypes); biases f32.
    """
    B, S, E = x.shape
    H = w1.shape[0]
    M = B * S

    vmem_limit = _vmem_limit_bytes()
    resident_bytes = 2 * (w1.size * w1.dtype.itemsize + w2.size * w2.dtype.itemsize
                          + 4 * (H + E))
    if tm is None:
        tm, n_steps = _pick_tiles(M, E, H, x.dtype.itemsize, x.dtype.itemsize,
                                  resident_bytes, vmem_limit)
    else:
        assert tm % 128 == 0, "tm must be a multiple of 128 (lane axis)"
        n_steps = _cdiv(_round_up(M, 128), tm)
    m_padded = tm * n_steps

    # Transposed, lane-dense layout for the streamed activation: (E, M).
    # TODO(synk): this transpose+pad is one extra HBM pass over x; a fused
    # transformer-block kernel would produce x^T directly.
    xt = x.reshape(M, E).T
    if m_padded != M:
        xt = jnp.pad(xt, ((0, 0), (0, m_padded - M)))

    b1_2d = b1.reshape(H, 1).astype(jnp.float32)
    b2_2d = b2.reshape(E, 1).astype(jnp.float32)

    kernel = functools.partial(ffn_kernel, approx_gelu=approx_gelu)

    def run(single_buffer_weights):
        def wspec(shape):
            # Weights/biases are grid-invariant (constant index_map); a single
            # buffer halves their VMEM footprint (matters on v7x at real E/H).
            if single_buffer_weights:
                return pl.BlockSpec(shape, lambda i: (0, 0),
                                    pipeline_mode=pl.Buffered(1))
            return pl.BlockSpec(shape, lambda i: (0, 0))

        return pl.pallas_call(
            kernel,
            out_shape=jax.ShapeDtypeStruct((E, m_padded), x.dtype),
            grid_spec=pltpu.PrefetchScalarGridSpec(
                num_scalar_prefetch=0,
                grid=(n_steps,),
                in_specs=[
                    pl.BlockSpec((E, tm), lambda i: (0, i)),   # x^T lane-dense tile
                    wspec((H, E)),                             # W1 (resident)
                    wspec((H, 1)),                             # b1 (resident)
                    wspec((E, H)),                             # W2 (resident)
                    wspec((E, 1)),                             # b2 (resident)
                ],
                out_specs=pl.BlockSpec((E, tm), lambda i: (0, i)),
            ),
            compiler_params=pltpu.CompilerParams(
                # Column tiles are independent -> shard across both TCs on v7x.
                dimension_semantics=("parallel",),
                vmem_limit_bytes=int(vmem_limit),
            ),
        )(xt, w1, b1_2d, w2, b2_2d)

    try:
        out_t = run(True)
    except Exception:
        # TODO(synk): drop fallback once pl.Buffered(1) on resident weights is
        # guaranteed by the deployment jax version.
        out_t = run(False)

    out = out_t[:, :M].T
    return out.reshape(B, S, E)


def init_params(key):
    """torch.nn.Linear-style init (U(-k, k), k=1/sqrt(fan_in)), torch (out,in) layout."""
    k1, k2, k3, k4 = jax.random.split(key, 4)
    bound1 = 1.0 / math.sqrt(EMB_SIZE)
    bound2 = 1.0 / math.sqrt(HIDDEN)
    w1 = jax.random.uniform(k1, (HIDDEN, EMB_SIZE), jnp.float32, -bound1, bound1)
    b1 = jax.random.uniform(k2, (HIDDEN,), jnp.float32, -bound1, bound1)
    w2 = jax.random.uniform(k3, (EMB_SIZE, HIDDEN), jnp.float32, -bound2, bound2)
    b2 = jax.random.uniform(k4, (EMB_SIZE,), jnp.float32, -bound2, bound2)
    return w1, b1, w2, b2


def _reference(x, w1, b1, w2, b2):
    x2d = x.reshape(-1, EMB_SIZE).astype(jnp.float32)
    h = x2d @ w1.T + b1
    h = 0.5 * h * (1.0 + jax.lax.erf(h / math.sqrt(2.0)))
    y = h @ w2.T + b2
    return y.reshape(x.shape)


if __name__ == "__main__":
    key = jax.random.PRNGKey(0)
    kx, kp = jax.random.split(key)
    x = jax.random.normal(kx, (BATCH, SEQ, EMB_SIZE), jnp.float32)
    w1, b1, w2, b2 = init_params(kp)

    # --- f32 path (exact torch parity) ---
    y = feed_forward(x, w1, b1, w2, b2)
    jax.block_until_ready(y)
    y_ref = _reference(x, w1, b1, w2, b2)
    assert y.shape == (BATCH, SEQ, EMB_SIZE)
    assert jnp.allclose(y, y_ref, atol=1e-5, rtol=1e-5), "f32 mismatch vs reference"

    # --- bf16 production path (f32 MXU accumulation + f32 GELU inside) ---
    y_bf16 = feed_forward(x.astype(jnp.bfloat16), w1.astype(jnp.bfloat16), b1,
                          w2.astype(jnp.bfloat16), b2)
    jax.block_until_ready(y_bf16)
    assert jnp.allclose(y_bf16.astype(jnp.float32), y_ref, atol=5e-2, rtol=5e-2), \
        "bf16 mismatch vs reference"

    # --- larger M: exercises multi-step grid (>=2 parallel steps) + padding ---
    x_big = jax.random.normal(kx, (2, 200, EMB_SIZE), jnp.float32)   # M=400 -> 2 tiles of 256
    y_big = feed_forward(x_big, w1, b1, w2, b2)
    jax.block_until_ready(y_big)
    y_big_ref = _reference(x_big, w1, b1, w2, b2)
    assert jnp.allclose(y_big, y_big_ref, atol=1e-5, rtol=1e-5), "big-M mismatch vs reference"

    print("KERNEL_OK")
</pallas_src>

<mosaic_0001>
module attributes {stable_mosaic.version = 11 : i64} {
  func.func @ffn_kernel(%arg0: i32, %arg1: memref<32x128xf32, #tpu.memory_space<vmem>>, %arg2: memref<128x32xf32, #tpu.memory_space<vmem>>, %arg3: memref<128x1xf32, #tpu.memory_space<vmem>>, %arg4: memref<32x128xf32, #tpu.memory_space<vmem>>, %arg5: memref<32x1xf32, #tpu.memory_space<vmem>>, %arg6: memref<32x128xf32, #tpu.memory_space<vmem>>) attributes {dimension_semantics = [#tpu.dimension_semantics<parallel>], iteration_bounds = array<i64: 1>, scalar_prefetch = 0 : i64, scratch_operands = 0 : i64, tpu.core_type = #tpu.core_type<tc>, window_params = [{transform_indices = @transform_0, window_bounds = array<i64: 32, 128>}, {pipeline_mode = #tpu.pipeline_mode<synchronous>, transform_indices = @transform_1, window_bounds = array<i64: 128, 32>}, {pipeline_mode = #tpu.pipeline_mode<synchronous>, transform_indices = @transform_2, window_bounds = array<i64: 128, 1>}, {pipeline_mode = #tpu.pipeline_mode<synchronous>, transform_indices = @transform_3, window_bounds = array<i64: 32, 128>}, {pipeline_mode = #tpu.pipeline_mode<synchronous>, transform_indices = @transform_4, window_bounds = array<i64: 32, 1>}, {transform_indices = @transform_5, window_bounds = array<i64: 32, 128>}]} {
    %c0 = arith.constant 0 : index
    %c0_0 = arith.constant 0 : index
    %0 = vector.load %arg1[%c0, %c0_0] : memref<32x128xf32, #tpu.memory_space<vmem>>, vector<32x128xf32>
    %c0_1 = arith.constant 0 : index
    %c0_2 = arith.constant 0 : index
    %1 = vector.load %arg2[%c0_1, %c0_2] : memref<128x32xf32, #tpu.memory_space<vmem>>, vector<128x32xf32>
    %cst = arith.constant dense<0.000000e+00> : vector<128x128xf32>
    %2 = tpu.matmul %1, %0, %cst {dimension_numbers = #tpu.dot_dimension_numbers<[1], [0], [0], [1], [0, 0, 1, 1], [], []>} : vector<128x32xf32>, vector<32x128xf32>, vector<128x128xf32> -> vector<128x128xf32>
    %c0_3 = arith.constant 0 : index
    %c0_4 = arith.constant 0 : index
    %3 = vector.load %arg3[%c0_3, %c0_4] : memref<128x1xf32, #tpu.memory_space<vmem>>, vector<128x1xf32>
    %4 = vector.broadcast %3 : vector<128x1xf32> to vector<128x128xf32>
    %5 = arith.addf %2, %4 : vector<128x128xf32>
    %cst_5 = arith.constant 5.000000e-01 : f32
    %6 = vector.broadcast %cst_5 : f32 to vector<128x128xf32>
    %7 = arith.mulf %6, %5 : vector<128x128xf32>
    %cst_6 = arith.constant 0.707106769 : f32
    %8 = vector.broadcast %cst_6 : f32 to vector<128x128xf32>
    %9 = arith.mulf %5, %8 : vector<128x128xf32>
    %10 = math.erf %9 : vector<128x128xf32>
    %cst_7 = arith.constant 1.000000e+00 : f32
    %11 = vector.broadcast %cst_7 : f32 to vector<128x128xf32>
    %12 = arith.addf %11, %10 : vector<128x128xf32>
    %13 = arith.mulf %7, %12 : vector<128x128xf32>
    %c0_8 = arith.constant 0 : index
    %c0_9 = arith.constant 0 : index
    %14 = vector.load %arg4[%c0_8, %c0_9] : memref<32x128xf32, #tpu.memory_space<vmem>>, vector<32x128xf32>
    %cst_10 = arith.constant dense<0.000000e+00> : vector<32x128xf32>
    %15 = tpu.matmul %14, %13, %cst_10 {dimension_numbers = #tpu.dot_dimension_numbers<[1], [0], [0], [1], [0, 0, 1, 1], [], []>} : vector<32x128xf32>, vector<128x128xf32>, vector<32x128xf32> -> vector<32x128xf32>
    %c0_11 = arith.constant 0 : index
    %c0_12 = arith.constant 0 : index
    %16 = vector.load %arg5[%c0_11, %c0_12] : memref<32x1xf32, #tpu.memory_space<vmem>>, vector<32x1xf32>
    %17 = vector.broadcast %16 : vector<32x1xf32> to vector<32x128xf32>
    %18 = arith.addf %15, %17 : vector<32x128xf32>
    %c0_13 = arith.constant 0 : index
    %c0_14 = arith.constant 0 : index
    %19 = vector.load %arg6[%c0_13, %c0_14] : memref<32x128xf32, #tpu.memory_space<vmem>>, vector<32x128xf32>
    tpu.vector_store %arg6[%c0_13, %c0_14], %18 {strides = array<i32>} : memref<32x128xf32, #tpu.memory_space<vmem>>, vector<32x128xf32>,
    return
  }
  func.func @transform_0(%arg0: i32) -> (i32, i32) {
    %c0_i32 = arith.constant 0 : i32
    %c0_i32_0 = arith.constant 0 : i32
    return %c0_i32, %arg0 : i32, i32
  }
  func.func @transform_1(%arg0: i32) -> (i32, i32) {
    %c0_i32 = arith.constant 0 : i32
    %c0_i32_0 = arith.constant 0 : i32
    %c0_i32_1 = arith.constant 0 : i32
    return %c0_i32, %c0_i32_0 : i32, i32
  }
  func.func @transform_2(%arg0: i32) -> (i32, i32) {
    %c0_i32 = arith.constant 0 : i32
    %c0_i32_0 = arith.constant 0 : i32
    %c0_i32_1 = arith.constant 0 : i32
    return %c0_i32, %c0_i32_0 : i32, i32
  }
  func.func @transform_3(%arg0: i32) -> (i32, i32) {
    %c0_i32 = arith.constant 0 : i32
    %c0_i32_0 = arith.constant 0 : i32
    %c0_i32_1 = arith.constant 0 : i32
    return %c0_i32, %c0_i32_0 : i32, i32
  }
  func.func @transform_4(%arg0: i32) -> (i32, i32) {
    %c0_i32 = arith.constant 0 : i32
    %c0_i32_0 = arith.constant 0 : i32
    %c0_i32_1 = arith.constant 0 : i32
    return %c0_i32, %c0_i32_0 : i32, i32
  }
  func.func @transform_5(%arg0: i32) -> (i32, i32) {
    %c0_i32 = arith.constant 0 : i32
    %c0_i32_0 = arith.constant 0 : i32
    return %c0_i32, %arg0 : i32, i32
  }
}

module attributes {stable_mosaic.version = 11 : i64} {
  func.func @ffn_kernel(%arg0: i32, %arg1: memref<32x128xf32, #tpu.memory_space<vmem>>, %arg2: memref<128x32xf32, #tpu.memory_space<vmem>>, %arg3: memref<128x1xf32, #tpu.memory_space<vmem>>, %arg4: memref<32x128xf32, #tpu.memory_space<vmem>>, %arg5: memref<32x1xf32, #tpu.memory_space<vmem>>, %arg6: memref<32x128xf32, #tpu.memory_space<vmem>>) attributes {dimension_semantics = [#tpu.dimension_semantics<parallel>], iteration_bounds = array<i64: 1>, scalar_prefetch = 0 : i64, scratch_operands = 0 : i64, tpu.core_type = #tpu.core_type<tc>, window_params = [{transform_indices = @transform_0, window_bounds = array<i64: 32, 128>}, {pipeline_mode = #tpu.pipeline_mode<synchronous>, transform_indices = @transform_1, window_bounds = array<i64: 128, 32>}, {pipeline_mode = #tpu.pipeline_mode<synchronous>, transform_indices = @transform_2, window_bounds = array<i64: 128, 1>}, {pipeline_mode = #tpu.pipeline_mode<synchronous>, transform_indices = @transform_3, window_bounds = array<i64: 32, 128>}, {pipeline_mode = #tpu.pipeline_mode<synchronous>, transform_indices = @transform_4, window_bounds = array<i64: 32, 1>}, {transform_indices = @transform_5, window_bounds = array<i64: 32, 128>}]} {
    %c0 = arith.constant 0 : index
    %c0_0 = arith.constant 0 : index
    %0 = vector.load %arg1[%c0, %c0_0] : memref<32x128xf32, #tpu.memory_space<vmem>>, vector<32x128xf32>
    %c0_1 = arith.constant 0 : index
    %c0_2 = arith.constant 0 : index
    %1 = vector.load %arg2[%c0_1, %c0_2] : memref<128x32xf32, #tpu.memory_space<vmem>>, vector<128x32xf32>
    %cst = arith.constant dense<0.000000e+00> : vector<128x128xf32>
    %2 = tpu.matmul %1, %0, %cst {dimension_numbers = #tpu.dot_dimension_numbers<[1], [0], [0], [1], [0, 0, 1, 1], [], []>} : vector<128x32xf32>, vector<32x128xf32>, vector<128x128xf32> -> vector<128x128xf32>
    %c0_3 = arith.constant 0 : index
    %c0_4 = arith.constant 0 : index
    %3 = vector.load %arg3[%c0_3, %c0_4] : memref<128x1xf32, #tpu.memory_space<vmem>>, vector<128x1xf32>
    %4 = vector.broadcast %3 : vector<128x1xf32> to vector<128x128xf32>
    %5 = arith.addf %2, %4 : vector<128x128xf32>
    %cst_5 = arith.constant 5.000000e-01 : f32
    %6 = vector.broadcast %cst_5 : f32 to vector<128x128xf32>
    %7 = arith.mulf %6, %5 : vector<128x128xf32>
    %cst_6 = arith.constant 0.707106769 : f32
    %8 = vector.broadcast %cst_6 : f32 to vector<128x128xf32>
    %9 = arith.mulf %5, %8 : vector<128x128xf32>
    %10 = math.erf %9 : vector<128x128xf32>
    %cst_7 = arith.constant 1.000000e+00 : f32
    %11 = vector.broadcast %cst_7 : f32 to vector<128x128xf32>
    %12 = arith.addf %11, %10 : vector<128x128xf32>
    %13 = arith.mulf %7, %12 : vector<128x128xf32>
    %c0_8 = arith.constant 0 : index
    %c0_9 = arith.constant 0 : index
    %14 = vector.load %arg4[%c0_8, %c0_9] : memref<32x128xf32, #tpu.memory_space<vmem>>, vector<32x128xf32>
    %cst_10 = arith.constant dense<0.000000e+00> : vector<32x128xf32>
    %15 = tpu.matmul %14, %13, %cst_10 {dimension_numbers = #tpu.dot_dimension_numbers<[1], [0], [0], [1], [0, 0, 1, 1], [], []>} : vector<32x128xf32>, vector<128x128xf32>, vector<32x128xf32> -> vector<32x128xf32>
    %c0_11 = arith.constant 0 : index
    %c0_12 = arith.constant 0 : index
    %16 = vector.load %arg5[%c0_11, %c0_12] : memref<32x1xf32, #tpu.memory_space<vmem>>, vector<32x1xf32>
    %17 = vector.broadcast %16 : vector<32x1xf32> to vector<32x128xf32>
    %18 = arith.addf %15, %17 : vector<32x128xf32>
    %c0_13 = arith.constant 0 : index
    %c0_14 = arith.constant 0 : index
    %19 = vector.load %arg6[%c0_13, %c0_14] : memref<32x128xf32, #tpu.memory_space<vmem>>, vector<32x128xf32>
    tpu.vector_store %arg6[%c0_13, %c0_14], %18 {strides = array<i32>} : memref<32x128xf32, #tpu.memory_space<vmem>>, vector<32x128xf32>,
    return
  }
  func.func @transform_0(%arg0: i32) -> (i32, i32) {
    %c0_i32 = arith.constant 0 : i32
    %c0_i32_0 = arith.constant 0 : i32
    return %c0_i32, %arg0 : i32, i32
  }
  func.func @transform_1(%arg0: i32) -> (i32, i32) {
    %c0_i32 = arith.constant 0 : i32
    %c0_i32_0 = arith.constant 0 : i32
    %c0_i32_1 = arith.constant 0 : i32
    return %c0_i32, %c0_i32_0 : i32, i32
  }
  func.func @transform_2(%arg0: i32) -> (i32, i32) {
    %c0_i32 = arith.constant 0 : i32
    %c0_i32_0 = arith.constant 0 : i32
    %c0_i32_1 = arith.constant 0 : i32
    return %c0_i32, %c0_i32_0 : i32, i32
  }
  func.func @transform_3(%arg0: i32) -> (i32, i32) {
    %c0_i32 = arith.constant 0 : i32
    %c0_i32_0 = arith.constant 0 : i32
    %c0_i32_1 = arith.constant 0 : i32
    return %c0_i32, %c0_i32_0 : i32, i32
  }
  func.func @transform_4(%arg0: i32) -> (i32, i32) {
    %c0_i32 = arith.constant 0 : i32
    %c0_i32_0 = arith.constant 0 : i32
    %c0_i32_1 = arith.constant 0 : i32
    return %c0_i32, %c0_i32_0 : i32, i32
  }
  func.func @transform_5(%arg0: i32) -> (i32, i32) {
    %c0_i32 = arith.constant 0 : i32
    %c0_i32_0 = arith.constant 0 : i32
    return %c0_i32, %arg0 : i32, i32
  }
}

</mosaic_0001>

<bundles_post_ra>
// kernel: tpu_custom_call.1
= control target key start
LH: loop header
LB: loop body
LE: loop exit
PB: predicated region body
PF: predicated region fallthrough
CT: control target
= control target key end

     0   :  { %vm137_vm0 = vcmask 261120   ;;  %v730_v3 = vmov 0   ;;  %s977_s0 = inlined_call_operand.vmem [shape: f32[32,128], index: 0, kind: input, shape index: {}]   ;;  %s978_s1 = inlined_call_operand.vmem [shape: f32[128,32], index: 1, kind: input, shape index: {}]   ;;  %s979_s2 = inlined_call_operand.vmem [shape: f32[128,1], index: 2, kind: input, shape index: {}]   ;;  %s980_s3 = inlined_call_operand.vmem [shape: f32[32,128], index: 3, kind: input, shape index: {}]   ;;  %s981_s4 = inlined_call_operand.vmem [shape: f32[32,1], index: 4, kind: input, shape index: {}]   ;;  %s982_s5 = inlined_call_operand.hbm [shape: f32[32,128], index: 5, kind: output, shape index: {}]  }
   0x1   :  { %v24_v0 = vld [vmem:[%s977_s0 + $0x18] sm:$0xff]  ;;  %v23_v1 = vld [vmem:[%s977_s0 + $0x10] sm:$0xff]  ;;  %v25_v2 = vld [vmem:[%s978_s1] sm:$0xff]  ;;  %674 = vset.pattern.permute.xlu0 %v730_v3  ;;  %675 = vset.pattern.permute.xlu1 %v730_v3 }
   0x2   :  { %600 = vmatprep.subr.mxu0 %v24_v0  ;;  %v22_v4 = vld [vmem:[%s977_s0 + $0x8] sm:$0xff]  ;;  %608 = vmatprep.mubr.msk.f32.mxu0 %vm137_vm0, %v25_v2  ;;  %v21_v5 = vld [vmem:[%s977_s0] sm:$0xff]  ;;  %v56_v7 = vld [vmem:[%s979_s2 + $0x78] sm:$0xff] }
   0x3   :  { %601 = vmatpush3.msra.mxu0 %v24_v0  ;;  %v26_v6 = vld [vmem:[%s978_s1 + $0x8] sm:$0xff]  ;;  %v27_v8 = vld [vmem:[%s978_s1 + $0x10] sm:$0xff]  ;;  %134 = vperm.xlu0 %674, %v56_v7   ;;  %v53_v11 = vld [vmem:[%s979_s2 + $0x60] sm:$0xff] }
   0x4   :  { %602 = vmatprep.subr.mxu0 %v23_v1  ;;  %v54_v9 = vld [vmem:[%s979_s2 + $0x68] sm:$0xff]  ;;  %v55_v10 = vld [vmem:[%s979_s2 + $0x70] sm:$0xff]  ;;  %v28_v12 = vld [vmem:[%s978_s1 + $0x18] sm:$0xff] }
   0x5   :  { %603 = vmatpush3.msra.mxu0 %v23_v1  ;;  %124 = vperm.xlu1 %675, %v54_v9   ;;  %v29_v13 = vld [vmem:[%s978_s1 + $0x20] sm:$0xff]  ;;  %v52_v14 = vld [vmem:[%s979_s2 + $0x58] sm:$0xff]  ;;  %v51_v15 = vld [vmem:[%s979_s2 + $0x50] sm:$0xff] }
   0x6   :  { %604 = vmatprep.subr.mxu0 %v22_v4 }
   0x7   :  { %605 = vmatpush3.msra.mxu0 %v22_v4  ;;  %129 = vperm.xlu0 %674, %v55_v10  }
   0x8   :  { %606 = vmatprep.subr.mxu0 %v21_v5 }
   0x9   :  { %607 = vmatpush3.msra.mxu0 %v21_v5  ;;  %119 = vperm.xlu1 %675, %v53_v11  }
   0xa   :  { %609 = vmatmul.mubr.msk.f32.vlgmr.msra.gmra.mxu0 %vm137_vm0, %v26_v6 }
   0xb   :  { %611 = vmatprep.mubr.msk.f32.mxu0 %vm137_vm0, %v27_v8 }
   0xe   :  { %612 = vmatmul.mubr.msk.f32.gmra.mxu0 %vm137_vm0, %v28_v12 }
   0xf   :  { %10 = vsyncpa [#allocation3], 0  ;;  %614 = vmatprep.mubr.msk.f32.mxu0 %vm137_vm0, %v29_v13  ;;  %v30_v16 = vld [vmem:[%s978_s1 + $0x28] sm:$0xff]  ;;  %v31_v17 = vld [vmem:[%s978_s1 + $0x30] sm:$0xff]  ;;  %114 = vperm.xlu0 %674, %v52_v14   ;;  %s731_s25 = smov [#allocation2]  }
  0x10   :  { %109 = vperm.xlu1 %675, %v51_v15   ;;  %v50_v18 = vld [vmem:[%s979_s2 + $0x48] sm:$0xff]  ;;  %v49_v19 = vld [vmem:[%s979_s2 + $0x40] sm:$0xff]  ;;  %v32_v20 = vld [vmem:[%s978_s1 + $0x38] sm:$0xff]  ;;  %s533_s26 = sshll.u32 %s731_s25, 4  ;;  %s534_s26 = int_to_ptr.vmem [resolvable:$true] %s533_s26 }
  0x11   :  { %v33_v21 = vld [vmem:[%s978_s1 + $0x40] sm:$0xff]  ;;  %v48_v22 = vld [vmem:[%s979_s2 + $0x38] sm:$0xff]  ;;  %v47_v23 = vld [vmem:[%s979_s2 + $0x30] sm:$0xff]  ;;  %p713_p1 = scmp.lt.s32.totalorder %s534_s26, %s534_s26 }
  0x12   :  { %615 = vmatmul.mubr.msk.f32.gmra.mxu0 %vm137_vm0, %v30_v16  ;;  %v34_v24 = vld [vmem:[%s978_s1 + $0x48] sm:$0xff]  ;;  %v35_v25 = vld [vmem:[%s978_s1 + $0x50] sm:$0xff]  ;;  %v45_v27 = vld [vmem:[%s979_s2 + $0x20] sm:$0xff] }
  0x13   :  { %617 = vmatprep.mubr.msk.f32.mxu0 %vm137_vm0, %v31_v17  ;;  %104 = vperm.xlu0 %674, %v50_v18   ;;  %v46_v26 = vld [vmem:[%s979_s2 + $0x28] sm:$0xff]  ;;  %v36_v28 = vld [vmem:[%s978_s1 + $0x58] sm:$0xff]  ;;  %v37_v29 = vld [vmem:[%s978_s1 + $0x60] sm:$0xff] }
  0x14   :  { %99 = vperm.xlu1 %675, %v49_v19   ;;  %v44_v30 = vld [vmem:[%s979_s2 + $0x18] sm:$0xff]  ;;  %v43_v31 = vld [vmem:[%s979_s2 + $0x10] sm:$0xff]  ;;  %v38_v32 = vld [vmem:[%s978_s1 + $0x68] sm:$0xff] }
  0x15   :  { %v39_v33 = vld [vmem:[%s978_s1 + $0x70] sm:$0xff]  ;;  %v42_v34 = vld [vmem:[%s979_s2 + $0x8] sm:$0xff]  ;;  %v41_v35 = vld [vmem:[%s979_s2] sm:$0xff] }
  0x16   :  { %618 = vmatmul.mubr.msk.f32.gmra.mxu0 %vm137_vm0, %v32_v20  ;;  %v40_v36 = vld [vmem:[%s978_s1 + $0x78] sm:$0xff]  ;;  %v415_v37 = vld [vmem:[%s981_s4] sm:$0xff]  ;;  %v416_v38 = vld [vmem:[%s981_s4 + $0x8] sm:$0xff] }
  0x17   :  { %620 = vmatprep.mubr.msk.f32.mxu0 %vm137_vm0, %v33_v21  ;;  %94 = vperm.xlu0 %674, %v48_v22   ;;  %v417_v39 = vld [vmem:[%s981_s4 + $0x10] sm:$0xff]  ;;  %v418_v40 = vld [vmem:[%s981_s4 + $0x18] sm:$0xff]  ;;  %v411_v41 = vld [vmem:[%s980_s3] sm:$0xff] }
  0x18   :  { %89 = vperm.xlu1 %675, %v47_v23   ;;  %664 = vmatprep.mubr.f32.mxu1 %v411_v41 }
  0x1a   :  { %621 = vmatmul.mubr.msk.f32.gmra.mxu0 %vm137_vm0, %v34_v24 }
  0x1b   :  { %623 = vmatprep.mubr.msk.f32.mxu0 %vm137_vm0, %v35_v25  ;;  %84 = vperm.xlu0 %674, %v46_v26  }
  0x1c   :  { %79 = vperm.xlu1 %675, %v45_v27  }
  0x1e   :  { %624 = vmatmul.mubr.msk.f32.gmra.mxu0 %vm137_vm0, %v36_v28 }
  0x1f   :  { %626 = vmatprep.mubr.msk.f32.mxu0 %vm137_vm0, %v37_v29  ;;  %74 = vperm.xlu0 %674, %v44_v30  }
  0x20   :  { %69 = vperm.xlu1 %675, %v43_v31  }
  0x22   :  { %627 = vmatmul.mubr.msk.f32.gmra.mxu0 %vm137_vm0, %v38_v32 }
  0x23   :  { %629 = vmatprep.mubr.msk.f32.mxu0 %vm137_vm0, %v39_v33  ;;  %64 = vperm.xlu0 %674, %v42_v34  }
  0x24   :  { %59 = vperm.xlu1 %675, %v41_v35  }
  0x26   :  { %630 = vmatmul.mubr.msk.f32.gmra.mxu0 %vm137_vm0, %v40_v36 }
  0x27   :  { %421 = vperm.xlu0 %674, %v415_v37  }
  0x28   :  { %426 = vperm.xlu1 %675, %v416_v38  }
  0x2b   :  { %431 = vperm.xlu0 %674, %v417_v39  }
  0x2c   :  { %436 = vperm.xlu1 %675, %v418_v40  }
  0x7e   :  { %v135_v44 = vpop.permute.xlu0 %134 }
  0x80   :  { %v125_v46 = vpop.permute.xlu1 %124 }
  0x82   :  { %v130_v49 = vpop.permute.xlu0 %129 }
  0x84   :  { %v120_v51 = vpop.permute.xlu1 %119 }
  0x8a   :  { %v115_v54 = vpop.permute.xlu0 %114 }
  0x8b   :  { %v110_v56 = vpop.permute.xlu1 %109 }
  0x8e   :  { %v105_v59 = vpop.permute.xlu0 %104 }
  0x8f   :  { %v100_v61 = vpop.permute.xlu1 %99 }
  0x92   :  { %v95_v1 = vpop.permute.xlu0 %94 }
  0x93   :  { %v90_v5 = vpop.permute.xlu1 %89 }
  0x96   :  { %v85_v13 = vpop.permute.xlu0 %84 }
  0x97   :  { %v80_v17 = vpop.permute.xlu1 %79 }
  0x9a   :  { %v75_v22 = vpop.permute.xlu0 %74 }
  0x9b   :  { %v70_v26 = vpop.permute.xlu1 %69 }
  0x9e   :  { %v65_v33 = vpop.permute.xlu0 %64 }
  0x9f   :  { %v60_v37 = vpop.permute.xlu1 %59 }
  0xca   :  { %v903_v42 = vpop.f32.mrf.mxu0 }
  0xcc   :  { %v905_v43 = vpop.f32.mrf.mxu0 }
  0xce   :  { %v613_v45 = vpop.f32.mrf.mxu0 }
  0xcf   :  { %v935_v30 = vadd.f32 %v613_v45, %v75_v22 }
  0xd0   :  { %v262_v47 = vpop.f32.mrf.mxu0 }
  0xd1   :  { %v938_v35 = vadd.f32 %v262_v47, %v70_v26  ;;  %v350_v45 = vmul.f32 0.70710677, %v935_v30 }
  0xd2   :  { %v616_v48 = vpop.f32.mrf.mxu0 }
  0xd3   :  { %v929_v25 = vadd.f32 %v616_v48, %v85_v13 }
  0xd4   :  { %v272_v50 = vpop.f32.mrf.mxu0 }
  0xd5   :  { %v932_v28 = vadd.f32 %v272_v50, %v80_v17  ;;  %v352_v31 = vmul.f32 0.70710677, %v929_v25 }
  0xd6   :  { %v619_v52 = vpop.f32.mrf.mxu0 }
  0xd7   :  { %v923_v20 = vadd.f32 %v619_v52, %v95_v1  ;;  %v351_v38 = vmul.f32 0.70710677, %v932_v28  ;;  %v349_v52 = vmul.f32 0.70710677, %v938_v35 }
  0xd8   :  { %v282_v53 = vpop.f32.mrf.mxu0 }
  0xd9   :  { %v926_v23 = vadd.f32 %v282_v53, %v90_v5  ;;  %v354_v27 = vmul.f32 0.70710677, %v923_v20 }
  0xda   :  { %v622_v55 = vpop.f32.mrf.mxu0 }
  0xdb   :  { %v917_v14 = vadd.f32 %v622_v55, %v105_v59  ;;  %v353_v29 = vmul.f32 0.70710677, %v926_v23 }
  0xdc   :  { %v292_v57 = vpop.f32.mrf.mxu0 }
  0xdd   :  { %v920_v18 = vadd.f32 %v292_v57, %v100_v61  ;;  %v356_v21 = vmul.f32 0.70710677, %v917_v14  ;;  %v340_v5 = vmul.f32 0.5, %v917_v14  ;;  %v337_v14 = vmul.f32 0.5, %v926_v23 }
  0xde   :  { %v625_v58 = vpop.f32.mrf.mxu0  ;;  %v334_v23 = vmul.f32 0.5, %v935_v30 }
  0xdf   :  { %v912_v6 = vadd.f32 %v625_v58, %v115_v54  ;;  %v355_v24 = vmul.f32 0.70710677, %v920_v18 }
  0xe0   :  { %v302_v60 = vpop.f32.mrf.mxu0 }
  0xe1   :  { %v915_v10 = vadd.f32 %v302_v60, %v110_v56  ;;  %v358_v15 = vmul.f32 0.70710677, %v912_v6  ;;  %v342_v61 = vmul.f32 0.5, %v912_v6 }
  0xe2   :  { %v628_v62 = vpop.f32.mrf.mxu0 }
  0xe3   :  { %v907_v63 = vadd.f32 %v628_v62, %v125_v46  ;;  %v357_v19 = vmul.f32 0.70710677, %v915_v10  ;;  %v341_v1 = vmul.f32 0.5, %v915_v10  ;;  %v338_v10 = vmul.f32 0.5, %v923_v20 }
  0xe4   :  { %v312_v0 = vpop.f32.mrf.mxu0  ;;  %v335_v20 = vmul.f32 0.5, %v932_v28 }
  0xe5   :  { %v909_v2 = vadd.f32 %v312_v0, %v120_v51  ;;  %v360_v3 = vmul.f32 0.70710677, %v907_v63  ;;  %v946_v51 = vadd.f32 %v905_v43, %v60_v37  ;;  %v344_v53 = vmul.f32 0.5, %v907_v63 }
  0xe6   :  { %v631_v4 = vpop.f32.mrf.mxu0 }
  0xe7   :  { %v328_v7 = vadd.f32 %v631_v4, %v135_v44  ;;  %v359_v8 = vmul.f32 0.70710677, %v909_v2  ;;  %676 = verf.f32 %v360_v3  ;;  %v942_v44 = vadd.f32 %v903_v42, %v65_v33 }
  0xe8   :  { %v322_v9 = vpop.f32.mrf.mxu0  ;;  %v343_v57 = vmul.f32 0.5, %v909_v2  ;;  %v347_v60 = vmul.f32 0.70710677, %v946_v51 }
  0xe9   :  { %v362_v11 = vmul.f32 0.70710677, %v328_v7  ;;  %v323_v12 = vadd.f32 %v322_v9, %v130_v49  ;;  %v346_v39 = vmul.f32 0.5, %v328_v7  ;;  %v348_v56 = vmul.f32 0.70710677, %v942_v44 }
  0xea   :  { %v332_v28 = vmul.f32 0.5, %v942_v44  ;;  %v413_v44 = vld [vmem:[%s980_s3 + $0x10] sm:$0xff] }
  0xeb   :  { %678 = verf.f32 %v362_v11  ;;  %v361_v16 = vmul.f32 0.70710677, %v323_v12  ;;  %v345_v46 = vmul.f32 0.5, %v323_v12  ;;  %v339_v11 = vmul.f32 0.5, %v920_v18 }
  0xec   :  { %680 = verf.f32 %v359_v8  ;;  %v336_v18 = vmul.f32 0.5, %v929_v25  ;;  %v333_v25 = vmul.f32 0.5, %v938_v35  ;;  %v412_v35 = vld [vmem:[%s980_s3 + $0x8] sm:$0xff] }
  0xed   :  { %682 = verf.f32 %v361_v16 }
  0xee   :  { %684 = verf.f32 %v358_v15 }
  0xef   :  { %686 = verf.f32 %v357_v19 }
  0xf0   :  { %688 = verf.f32 %v356_v21 }
  0xf1   :  { %690 = verf.f32 %v355_v24 }
  0xf2   :  { %692 = verf.f32 %v354_v27 }
  0xf3   :  { %694 = verf.f32 %v353_v29 }
  0xf4   :  { %v677_v32 = vpop.eup %676  ;;  %696 = verf.f32 %v352_v31 }
  0xf5   :  { %v392_v50 = vadd.f32 1.0, %v677_v32  ;;  %698 = verf.f32 %v351_v38 }
  0xf6   :  { %700 = verf.f32 %v350_v45 }
  0xf7   :  { %v408_v58 = vmul.f32 %v392_v50, %v344_v53  ;;  %702 = verf.f32 %v349_v52 }
  0xf8   :  { %v679_v34 = vpop.eup %678  ;;  %704 = verf.f32 %v348_v56 }
  0xf9   :  { %v681_v36 = vpop.eup %680  ;;  %v394_v40 = vadd.f32 1.0, %v679_v34  ;;  %706 = verf.f32 %v347_v60 }
  0xfa   :  { %v683_v41 = vpop.eup %682  ;;  %v391_v42 = vadd.f32 1.0, %v681_v36 }
  0xfb   :  { %v410_v48 = vmul.f32 %v394_v40, %v346_v39  ;;  %v393_v49 = vadd.f32 1.0, %v683_v41  ;;  %v685_v47 = vpop.eup %684  ;;  %v331_v41 = vmul.f32 0.5, %v946_v51 }
  0xfc   :  { %v687_v55 = vpop.eup %686  ;;  %v390_v59 = vadd.f32 1.0, %v685_v47  ;;  %v407_v62 = vmul.f32 %v391_v42, %v343_v57 }
  0xfd   :  { %632 = vmatprep.subr.mxu1 %v410_v48  ;;  %v409_v54 = vmul.f32 %v393_v49, %v345_v46  ;;  %v689_v43 = vpop.eup %688  ;;  %v389_v63 = vadd.f32 1.0, %v687_v55  ;;  %v414_v46 = vld [vmem:[%s980_s3 + $0x18] sm:$0xff]  ;;  %v422_v49 = vpop.permute.xlu0 %421  ;;  %s708_s3 = scalar_lea.vmem %s534_s26, 512 }
  0xfe   :  { %633 = vmatpush3.msra.mxu1 %v410_v48  ;;  %v691_v0 = vpop.eup %690  ;;  %v406_v2 = vmul.f32 %v390_v59, %v342_v61  ;;  %v388_v3 = vadd.f32 1.0, %v689_v43  ;;  %v427_v48 = vpop.permute.xlu1 %426  ;;  %p709_p0 = scmp.ne.s32.totalorder %s534_s26, %s708_s3  ;;  %p714_p2 = scmp.lt.s32.totalorder %s708_s3, %s708_s3 }
  0xff   :  { %634 = vmatprep.subr.mxu1 %v409_v54  ;;  %v693_v4 = vpop.eup %692  ;;  %v405_v7 = vmul.f32 %v389_v63, %v341_v1  ;;  %v387_v8 = vadd.f32 1.0, %v691_v0 }
 0x100   :  { %635 = vmatpush3.msra.mxu1 %v409_v54  ;;  %v695_v6 = vpop.eup %694  ;;  %v404_v12 = vmul.f32 %v388_v3, %v340_v5  ;;  %v386_v13 = vadd.f32 1.0, %v693_v4  ;;  %p715_p3 = por %p714_p2, %p713_p1 }
 0x101   :  { %636 = vmatprep.subr.mxu1 %v408_v58  ;;  %v697_v9 = vpop.eup %696  ;;  %v403_v15 = vmul.f32 %v387_v8, %v339_v11  ;;  %v385_v16 = vadd.f32 1.0, %v695_v6  ;;  %v432_v55 = vpop.permute.xlu0 %431 }
 0x102   :  { %637 = vmatpush3.msra.mxu1 %v408_v58  ;;  %v699_v17 = vpop.eup %698  ;;  %v402_v19 = vmul.f32 %v386_v13, %v338_v10  ;;  %v384_v21 = vadd.f32 1.0, %v697_v9  ;;  %v437_v53 = vpop.permute.xlu1 %436  ;;  %p716_p4 = pnand %p715_p3, %p709_p0 }
 0x103   :  { %638 = vmatprep.subr.mxu1 %v407_v62  ;;  %v701_v22 = vpop.eup %700  ;;  %v401_v24 = vmul.f32 %v385_v16, %v337_v14  ;;  %v383_v26 = vadd.f32 1.0, %v699_v17 }
 0x104   :  { %639 = vmatpush3.msra.mxu1 %v407_v62  ;;  %v703_v27 = vpop.eup %702  ;;  %v400_v29 = vmul.f32 %v384_v21, %v336_v18  ;;  %v382_v31 = vadd.f32 1.0, %v701_v22 }
 0x105   :  { %640 = vmatprep.subr.mxu1 %v406_v2  ;;  %v705_v32 = vpop.eup %704  ;;  %v399_v33 = vmul.f32 %v383_v26, %v335_v20  ;;  %v381_v34 = vadd.f32 1.0, %v703_v27 }
 0x106   :  { %641 = vmatpush3.msra.mxu1 %v406_v2  ;;  %v707_v36 = vpop.eup %706  ;;  %v398_v37 = vmul.f32 %v382_v31, %v334_v23  ;;  %v380_v38 = vadd.f32 1.0, %v705_v32 }
 0x107   :  { %642 = vmatprep.subr.mxu1 %v405_v7  ;;  %v397_v39 = vmul.f32 %v381_v34, %v333_v25  ;;  %v379_v40 = vadd.f32 1.0, %v707_v36 }
 0x108   :  { %643 = vmatpush3.msra.mxu1 %v405_v7  ;;  %v396_v30 = vmul.f32 %v380_v38, %v332_v28 }
 0x109   :  { %644 = vmatprep.subr.mxu1 %v404_v12  ;;  %v395_v45 = vmul.f32 %v379_v40, %v331_v41 }
 0x10a   :  { %645 = vmatpush3.msra.mxu1 %v404_v12 }
 0x10b   :  { %646 = vmatprep.subr.mxu1 %v403_v15 }
 0x10c   :  { %647 = vmatpush3.msra.mxu1 %v403_v15 }
 0x10d   :  { %648 = vmatprep.subr.mxu1 %v402_v19 }
 0x10e   :  { %649 = vmatpush3.msra.mxu1 %v402_v19 }
 0x10f   :  { %650 = vmatprep.subr.mxu1 %v401_v24 }
 0x110   :  { %651 = vmatpush3.msra.mxu1 %v401_v24 }
 0x111   :  { %652 = vmatprep.subr.mxu1 %v400_v29 }
 0x112   :  { %653 = vmatpush3.msra.mxu1 %v400_v29 }
 0x113   :  { %654 = vmatprep.subr.mxu1 %v399_v33 }
 0x114   :  { %655 = vmatpush3.msra.mxu1 %v399_v33 }
 0x115   :  { %656 = vmatprep.subr.mxu1 %v398_v37 }
 0x116   :  { %657 = vmatpush3.msra.mxu1 %v398_v37 }
 0x117   :  { %658 = vmatprep.subr.mxu1 %v397_v39 }
 0x118   :  { %659 = vmatpush3.msra.mxu1 %v397_v39 }
 0x119   :  { %660 = vmatprep.subr.mxu1 %v396_v30 }
 0x11a   :  { %661 = vmatpush3.msra.mxu1 %v396_v30 }
 0x11b   :  { %662 = vmatprep.subr.mxu1 %v395_v45 }
 0x11c   :  { %663 = vmatpush3.msra.mxu1 %v395_v45 }
 0x11d   :  { %665 = vmatmul.mubr.f32.vlgmr.msra.gmra.mxu1 %v412_v35 }
 0x11e   :  { %667 = vmatprep.mubr.f32.mxu1 %v413_v44 }
 0x121   :  { %668 = vmatmul.mubr.f32.gmra.mxu1 %v414_v46 }
 0x1dd   :  { %v666_v50 = vpop.f32.mrf.mxu1 }
 0x1de   :  { %v511_v47 = vadd.f32 %v666_v50, %v427_v48 }
 0x1df   :  { %v505_v51 = vpop.f32.mrf.mxu1 }
 0x1e0   :  { %525 = vst [vmem:[#allocation2 + $0x8] sm:$0xff] %v511_v47  ;;  %v506_v52 = vadd.f32 %v505_v51, %v422_v49 }
 0x1e1   :  { %v669_v54 = vpop.f32.mrf.mxu1 }
 0x1e2   :  { %524 = vst [vmem:[#allocation2] sm:$0xff] %v506_v52  ;;  %v521_v42 = vadd.f32 %v669_v54, %v437_v53 }
 0x1e3   :  { %v515_v56 = vpop.f32.mrf.mxu1 }
 0x1e4   :  { %527 = vst [vmem:[#allocation2 + $0x18] sm:$0xff] %v521_v42  ;;  %v516_v57 = vadd.f32 %v515_v56, %v432_v55 }
 0x1e6   :  { %526 = vst [vmem:[#allocation2 + $0x10] sm:$0xff] %v516_v57 }
 0x1e7   :  { %719 = shalt.err (!%p716_p4)
}
 0x1e8   :  { %s732_s27 = smov 128   ;;  %s733_s28 = smov 8  }
 0x1e9   :  { %539 = dma.vmem_to_hbm [thread:$0]  %s534_s26, 512, %s982_s5, [#allocation3], %s732_s27, %s732_s27, %s733_s28  }
 0x1ea   :  { %728 = dma.done.wait [#allocation3], 512  }
 0x1eb   :  { %729 = vsyncadd [#allocation3], 4294966784 }
 0x1ec   :  { %543 = vsyncpa [#allocation3], 1 }

// kernel: tpu_custom_call.1
= control target key start
LH: loop header
LB: loop body
LE: loop exit
PB: predicated region body
PF: predicated region fallthrough
CT: control target
= control target key end

     0   :  { %vm137_vm0 = vcmask 261120   ;;  %v730_v3 = vmov 0   ;;  %s977_s0 = inlined_call_operand.vmem [shape: f32[32,128], index: 0, kind: input, shape index: {}]   ;;  %s978_s1 = inlined_call_operand.vmem [shape: f32[128,32], index: 1, kind: input, shape index: {}]   ;;  %s979_s2 = inlined_call_operand.vmem [shape: f32[128,1], index: 2, kind: input, shape index: {}]   ;;  %s980_s3 = inlined_call_operand.vmem [shape: f32[32,128], index: 3, kind: input, shape index: {}]   ;;  %s981_s4 = inlined_call_operand.vmem [shape: f32[32,1], index: 4, kind: input, shape index: {}]   ;;  %s982_s5 = inlined_call_operand.hbm [shape: f32[32,128], index: 5, kind: output, shape index: {}]  }
   0x1   :  { %v24_v0 = vld [vmem:[%s977_s0 + $0x18] sm:$0xff]  ;;  %v23_v1 = vld [vmem:[%s977_s0 + $0x10] sm:$0xff]  ;;  %v25_v2 = vld [vmem:[%s978_s1] sm:$0xff]  ;;  %674 = vset.pattern.permute.xlu0 %v730_v3  ;;  %675 = vset.pattern.permute.xlu1 %v730_v3 }
   0x2   :  { %600 = vmatprep.subr.mxu0 %v24_v0  ;;  %v22_v4 = vld [vmem:[%s977_s0 + $0x8] sm:$0xff]  ;;  %608 = vmatprep.mubr.msk.f32.mxu0 %vm137_vm0, %v25_v2  ;;  %v21_v5 = vld [vmem:[%s977_s0] sm:$0xff]  ;;  %v56_v7 = vld [vmem:[%s979_s2 + $0x78] sm:$0xff] }
   0x3   :  { %601 = vmatpush3.msra.mxu0 %v24_v0  ;;  %v26_v6 = vld [vmem:[%s978_s1 + $0x8] sm:$0xff]  ;;  %v27_v8 = vld [vmem:[%s978_s1 + $0x10] sm:$0xff]  ;;  %134 = vperm.xlu0 %674, %v56_v7   ;;  %v53_v11 = vld [vmem:[%s979_s2 + $0x60] sm:$0xff] }
   0x4   :  { %602 = vmatprep.subr.mxu0 %v23_v1  ;;  %v54_v9 = vld [vmem:[%s979_s2 + $0x68] sm:$0xff]  ;;  %v55_v10 = vld [vmem:[%s979_s2 + $0x70] sm:$0xff]  ;;  %v28_v12 = vld [vmem:[%s978_s1 + $0x18] sm:$0xff] }
   0x5   :  { %603 = vmatpush3.msra.mxu0 %v23_v1  ;;  %124 = vperm.xlu1 %675, %v54_v9   ;;  %v29_v13 = vld [vmem:[%s978_s1 + $0x20] sm:$0xff]  ;;  %v52_v14 = vld [vmem:[%s979_s2 + $0x58] sm:$0xff]  ;;  %v51_v15 = vld [vmem:[%s979_s2 + $0x50] sm:$0xff] }
   0x6   :  { %604 = vmatprep.subr.mxu0 %v22_v4 }
   0x7   :  { %605 = vmatpush3.msra.mxu0 %v22_v4  ;;  %129 = vperm.xlu0 %674, %v55_v10  }
   0x8   :  { %606 = vmatprep.subr.mxu0 %v21_v5 }
   0x9   :  { %607 = vmatpush3.msra.mxu0 %v21_v5  ;;  %119 = vperm.xlu1 %675, %v53_v11  }
   0xa   :  { %609 = vmatmul.mubr.msk.f32.vlgmr.msra.gmra.mxu0 %vm137_vm0, %v26_v6 }
   0xb   :  { %611 = vmatprep.mubr.msk.f32.mxu0 %vm137_vm0, %v27_v8 }
   0xe   :  { %612 = vmatmul.mubr.msk.f32.gmra.mxu0 %vm137_vm0, %v28_v12 }
   0xf   :  { %10 = vsyncpa [#allocation3], 0  ;;  %614 = vmatprep.mubr.msk.f32.mxu0 %vm137_vm0, %v29_v13  ;;  %v30_v16 = vld [vmem:[%s978_s1 + $0x28] sm:$0xff]  ;;  %v31_v17 = vld [vmem:[%s978_s1 + $0x30] sm:$0xff]  ;;  %114 = vperm.xlu0 %674, %v52_v14   ;;  %s731_s25 = smov [#allocation2]  }
  0x10   :  { %109 = vperm.xlu1 %675, %v51_v15   ;;  %v50_v18 = vld [vmem:[%s979_s2 + $0x48] sm:$0xff]  ;;  %v49_v19 = vld [vmem:[%s979_s2 + $0x40] sm:$0xff]  ;;  %v32_v20 = vld [vmem:[%s978_s1 + $0x38] sm:$0xff]  ;;  %s533_s26 = sshll.u32 %s731_s25, 4  ;;  %s534_s26 = int_to_ptr.vmem [resolvable:$true] %s533_s26 }
  0x11   :  { %v33_v21 = vld [vmem:[%s978_s1 + $0x40] sm:$0xff]  ;;  %v48_v22 = vld [vmem:[%s979_s2 + $0x38] sm:$0xff]  ;;  %v47_v23 = vld [vmem:[%s979_s2 + $0x30] sm:$0xff]  ;;  %p713_p1 = scmp.lt.s32.totalorder %s534_s26, %s534_s26 }
  0x12   :  { %615 = vmatmul.mubr.msk.f32.gmra.mxu0 %vm137_vm0, %v30_v16  ;;  %v34_v24 = vld [vmem:[%s978_s1 + $0x48] sm:$0xff]  ;;  %v35_v25 = vld [vmem:[%s978_s1 + $0x50] sm:$0xff]  ;;  %v45_v27 = vld [vmem:[%s979_s2 + $0x20] sm:$0xff] }
  0x13   :  { %617 = vmatprep.mubr.msk.f32.mxu0 %vm137_vm0, %v31_v17  ;;  %104 = vperm.xlu0 %674, %v50_v18   ;;  %v46_v26 = vld [vmem:[%s979_s2 + $0x28] sm:$0xff]  ;;  %v36_v28 = vld [vmem:[%s978_s1 + $0x58] sm:$0xff]  ;;  %v37_v29 = vld [vmem:[%s978_s1 + $0x60] sm:$0xff] }
  0x14   :  { %99 = vperm.xlu1 %675, %v49_v19   ;;  %v44_v30 = vld [vmem:[%s979_s2 + $0x18] sm:$0xff]  ;;  %v43_v31 = vld [vmem:[%s979_s2 + $0x10] sm:$0xff]  ;;  %v38_v32 = vld [vmem:[%s978_s1 + $0x68] sm:$0xff] }
  0x15   :  { %v39_v33 = vld [vmem:[%s978_s1 + $0x70] sm:$0xff]  ;;  %v42_v34 = vld [vmem:[%s979_s2 + $0x8] sm:$0xff]  ;;  %v41_v35 = vld [vmem:[%s979_s2] sm:$0xff] }
  0x16   :  { %618 = vmatmul.mubr.msk.f32.gmra.mxu0 %vm137_vm0, %v32_v20  ;;  %v40_v36 = vld [vmem:[%s978_s1 + $0x78] sm:$0xff]  ;;  %v415_v37 = vld [vmem:[%s981_s4] sm:$0xff]  ;;  %v416_v38 = vld [vmem:[%s981_s4 + $0x8] sm:$0xff] }
  0x17   :  { %620 = vmatprep.mubr.msk.f32.mxu0 %vm137_vm0, %v33_v21  ;;  %94 = vperm.xlu0 %674, %v48_v22   ;;  %v417_v39 = vld [vmem:[%s981_s4 + $0x10] sm:$0xff]  ;;  %v418_v40 = vld [vmem:[%s981_s4 + $0x18] sm:$0xff]  ;;  %v411_v41 = vld [vmem:[%s980_s3] sm:$0xff] }
  0x18   :  { %89 = vperm.xlu1 %675, %v47_v23   ;;  %664 = vmatprep.mubr.f32.mxu1 %v411_v41 }
  0x1a   :  { %621 = vmatmul.mubr.msk.f32.gmra.mxu0 %vm137_vm0, %v34_v24 }
  0x1b   :  { %623 = vmatprep.mubr.msk.f32.mxu0 %vm137_vm0, %v35_v25  ;;  %84 = vperm.xlu0 %674, %v46_v26  }
  0x1c   :  { %79 = vperm.xlu1 %675, %v45_v27  }
  0x1e   :  { %624 = vmatmul.mubr.msk.f32.gmra.mxu0 %vm137_vm0, %v36_v28 }
  0x1f   :  { %626 = vmatprep.mubr.msk.f32.mxu0 %vm137_vm0, %v37_v29  ;;  %74 = vperm.xlu0 %674, %v44_v30  }
  0x20   :  { %69 = vperm.xlu1 %675, %v43_v31  }
  0x22   :  { %627 = vmatmul.mubr.msk.f32.gmra.mxu0 %vm137_vm0, %v38_v32 }
  0x23   :  { %629 = vmatprep.mubr.msk.f32.mxu0 %vm137_vm0, %v39_v33  ;;  %64 = vperm.xlu0 %674, %v42_v34  }
  0x24   :  { %59 = vperm.xlu1 %675, %v41_v35  }
  0x26   :  { %630 = vmatmul.mubr.msk.f32.gmra.mxu0 %vm137_vm0, %v40_v36 }
  0x27   :  { %421 = vperm.xlu0 %674, %v415_v37  }
  0x28   :  { %426 = vperm.xlu1 %675, %v416_v38  }
  0x2b   :  { %431 = vperm.xlu0 %674, %v417_v39  }
  0x2c   :  { %436 = vperm.xlu1 %675, %v418_v40  }
  0x7e   :  { %v135_v44 = vpop.permute.xlu0 %134 }
  0x80   :  { %v125_v46 = vpop.permute.xlu1 %124 }
  0x82   :  { %v130_v49 = vpop.permute.xlu0 %129 }
  0x84   :  { %v120_v51 = vpop.permute.xlu1 %119 }
  0x8a   :  { %v115_v54 = vpop.permute.xlu0 %114 }
  0x8b   :  { %v110_v56 = vpop.permute.xlu1 %109 }
  0x8e   :  { %v105_v59 = vpop.permute.xlu0 %104 }
  0x8f   :  { %v100_v61 = vpop.permute.xlu1 %99 }
  0x92   :  { %v95_v1 = vpop.permute.xlu0 %94 }
  0x93   :  { %v90_v5 = vpop.permute.xlu1 %89 }
  0x96   :  { %v85_v13 = vpop.permute.xlu0 %84 }
  0x97   :  { %v80_v17 = vpop.permute.xlu1 %79 }
  0x9a   :  { %v75_v22 = vpop.permute.xlu0 %74 }
  0x9b   :  { %v70_v26 = vpop.permute.xlu1 %69 }
  0x9e   :  { %v65_v33 = vpop.permute.xlu0 %64 }
  0x9f   :  { %v60_v37 = vpop.permute.xlu1 %59 }
  0xca   :  { %v903_v42 = vpop.f32.mrf.mxu0 }
  0xcc   :  { %v905_v43 = vpop.f32.mrf.mxu0 }
  0xce   :  { %v613_v45 = vpop.f32.mrf.mxu0 }
  0xcf   :  { %v935_v30 = vadd.f32 %v613_v45, %v75_v22 }
  0xd0   :  { %v262_v47 = vpop.f32.mrf.mxu0 }
  0xd1   :  { %v938_v35 = vadd.f32 %v262_v47, %v70_v26  ;;  %v350_v45 = vmul.f32 0.70710677, %v935_v30 }
  0xd2   :  { %v616_v48 = vpop.f32.mrf.mxu0 }
  0xd3   :  { %v929_v25 = vadd.f32 %v616_v48, %v85_v13 }
  0xd4   :  { %v272_v50 = vpop.f32.mrf.mxu0 }
  0xd5   :  { %v932_v28 = vadd.f32 %v272_v50, %v80_v17  ;;  %v352_v31 = vmul.f32 0.70710677, %v929_v25 }
  0xd6   :  { %v619_v52 = vpop.f32.mrf.mxu0 }
  0xd7   :  { %v923_v20 = vadd.f32 %v619_v52, %v95_v1  ;;  %v351_v38 = vmul.f32 0.70710677, %v932_v28  ;;  %v349_v52 = vmul.f32 0.70710677, %v938_v35 }
  0xd8   :  { %v282_v53 = vpop.f32.mrf.mxu0 }
  0xd9   :  { %v926_v23 = vadd.f32 %v282_v53, %v90_v5  ;;  %v354_v27 = vmul.f32 0.70710677, %v923_v20 }
  0xda   :  { %v622_v55 = vpop.f32.mrf.mxu0 }
  0xdb   :  { %v917_v14 = vadd.f32 %v622_v55, %v105_v59  ;;  %v353_v29 = vmul.f32 0.70710677, %v926_v23 }
  0xdc   :  { %v292_v57 = vpop.f32.mrf.mxu0 }
  0xdd   :  { %v920_v18 = vadd.f32 %v292_v57, %v100_v61  ;;  %v356_v21 = vmul.f32 0.70710677, %v917_v14  ;;  %v340_v5 = vmul.f32 0.5, %v917_v14  ;;  %v337_v14 = vmul.f32 0.5, %v926_v23 }
  0xde   :  { %v625_v58 = vpop.f32.mrf.mxu0  ;;  %v334_v23 = vmul.f32 0.5, %v935_v30 }
  0xdf   :  { %v912_v6 = vadd.f32 %v625_v58, %v115_v54  ;;  %v355_v24 = vmul.f32 0.70710677, %v920_v18 }
  0xe0   :  { %v302_v60 = vpop.f32.mrf.mxu0 }
  0xe1   :  { %v915_v10 = vadd.f32 %v302_v60, %v110_v56  ;;  %v358_v15 = vmul.f32 0.70710677, %v912_v6  ;;  %v342_v61 = vmul.f32 0.5, %v912_v6 }
  0xe2   :  { %v628_v62 = vpop.f32.mrf.mxu0 }
  0xe3   :  { %v907_v63 = vadd.f32 %v628_v62, %v125_v46  ;;  %v357_v19 = vmul.f32 0.70710677, %v915_v10  ;;  %v341_v1 = vmul.f32 0.5, %v915_v10  ;;  %v338_v10 = vmul.f32 0.5, %v923_v20 }
  0xe4   :  { %v312_v0 = vpop.f32.mrf.mxu0  ;;  %v335_v20 = vmul.f32 0.5, %v932_v28 }
  0xe5   :  { %v909_v2 = vadd.f32 %v312_v0, %v120_v51  ;;  %v360_v3 = vmul.f32 0.70710677, %v907_v63  ;;  %v946_v51 = vadd.f32 %v905_v43, %v60_v37  ;;  %v344_v53 = vmul.f32 0.5, %v907_v63 }
  0xe6   :  { %v631_v4 = vpop.f32.mrf.mxu0 }
  0xe7   :  { %v328_v7 = vadd.f32 %v631_v4, %v135_v44  ;;  %v359_v8 = vmul.f32 0.70710677, %v909_v2  ;;  %676 = verf.f32 %v360_v3  ;;  %v942_v44 = vadd.f32 %v903_v42, %v65_v33 }
  0xe8   :  { %v322_v9 = vpop.f32.mrf.mxu0  ;;  %v343_v57 = vmul.f32 0.5, %v909_v2  ;;  %v347_v60 = vmul.f32 0.70710677, %v946_v51 }
  0xe9   :  { %v362_v11 = vmul.f32 0.70710677, %v328_v7  ;;  %v323_v12 = vadd.f32 %v322_v9, %v130_v49  ;;  %v346_v39 = vmul.f32 0.5, %v328_v7  ;;  %v348_v56 = vmul.f32 0.70710677, %v942_v44 }
  0xea   :  { %v332_v28 = vmul.f32 0.5, %v942_v44  ;;  %v413_v44 = vld [vmem:[%s980_s3 + $0x10] sm:$0xff] }
  0xeb   :  { %678 = verf.f32 %v362_v11  ;;  %v361_v16 = vmul.f32 0.70710677, %v323_v12  ;;  %v345_v46 = vmul.f32 0.5, %v323_v12  ;;  %v339_v11 = vmul.f32 0.5, %v920_v18 }
  0xec   :  { %680 = verf.f32 %v359_v8  ;;  %v336_v18 = vmul.f32 0.5, %v929_v25  ;;  %v333_v25 = vmul.f32 0.5, %v938_v35  ;;  %v412_v35 = vld [vmem:[%s980_s3 + $0x8] sm:$0xff] }
  0xed   :  { %682 = verf.f32 %v361_v16 }
  0xee   :  { %684 = verf.f32 %v358_v15 }
  0xef   :  { %686 = verf.f32 %v357_v19 }
  0xf0   :  { %688 = verf.f32 %v356_v21 }
  0xf1   :  { %690 = verf.f32 %v355_v24 }
  0xf2   :  { %692 = verf.f32 %v354_v27 }
  0xf3   :  { %694 = verf.f32 %v353_v29 }
  0xf4   :  { %v677_v32 = vpop.eup %676  ;;  %696 = verf.f32 %v352_v31 }
  0xf5   :  { %v392_v50 = vadd.f32 1.0, %v677_v32  ;;  %698 = verf.f32 %v351_v38 }
  0xf6   :  { %700 = verf.f32 %v350_v45 }
  0xf7   :  { %v408_v58 = vmul.f32 %v392_v50, %v344_v53  ;;  %702 = verf.f32 %v349_v52 }
  0xf8   :  { %v679_v34 = vpop.eup %678  ;;  %704 = verf.f32 %v348_v56 }
  0xf9   :  { %v681_v36 = vpop.eup %680  ;;  %v394_v40 = vadd.f32 1.0, %v679_v34  ;;  %706 = verf.f32 %v347_v60 }
  0xfa   :  { %v683_v41 = vpop.eup %682  ;;  %v391_v42 = vadd.f32 1.0, %v681_v36 }
  0xfb   :  { %v410_v48 = vmul.f32 %v394_v40, %v346_v39  ;;  %v393_v49 = vadd.f32 1.0, %v683_v41  ;;  %v685_v47 = vpop.eup %684  ;;  %v331_v41 = vmul.f32 0.5, %v946_v51 }
  0xfc   :  { %v687_v55 = vpop.eup %686  ;;  %v390_v59 = vadd.f32 1.0, %v685_v47  ;;  %v407_v62 = vmul.f32 %v391_v42, %v343_v57 }
  0xfd   :  { %632 = vmatprep.subr.mxu1 %v410_v48  ;;  %v409_v54 = vmul.f32 %v393_v49, %v345_v46  ;;  %v689_v43 = vpop.eup %688  ;;  %v389_v63 = vadd.f32 1.0, %v687_v55  ;;  %v414_v46 = vld [vmem:[%s980_s3 + $0x18] sm:$0xff]  ;;  %v422_v49 = vpop.permute.xlu0 %421  ;;  %s708_s3 = scalar_lea.vmem %s534_s26, 512 }
  0xfe   :  { %633 = vmatpush3.msra.mxu1 %v410_v48  ;;  %v691_v0 = vpop.eup %690  ;;  %v406_v2 = vmul.f32 %v390_v59, %v342_v61  ;;  %v388_v3 = vadd.f32 1.0, %v689_v43  ;;  %v427_v48 = vpop.permute.xlu1 %426  ;;  %p709_p0 = scmp.ne.s32.totalorder %s534_s26, %s708_s3  ;;  %p714_p2 = scmp.lt.s32.totalorder %s708_s3, %s708_s3 }
  0xff   :  { %634 = vmatprep.subr.mxu1 %v409_v54  ;;  %v693_v4 = vpop.eup %692  ;;  %v405_v7 = vmul.f32 %v389_v63, %v341_v1  ;;  %v387_v8 = vadd.f32 1.0, %v691_v0 }
 0x100   :  { %635 = vmatpush3.msra.mxu1 %v409_v54  ;;  %v695_v6 = vpop.eup %694  ;;  %v404_v12 = vmul.f32 %v388_v3, %v340_v5  ;;  %v386_v13 = vadd.f32 1.0, %v693_v4  ;;  %p715_p3 = por %p714_p2, %p713_p1 }
 0x101   :  { %636 = vmatprep.subr.mxu1 %v408_v58  ;;  %v697_v9 = vpop.eup %696  ;;  %v403_v15 = vmul.f32 %v387_v8, %v339_v11  ;;  %v385_v16 = vadd.f32 1.0, %v695_v6  ;;  %v432_v55 = vpop.permute.xlu0 %431 }
 0x102   :  { %637 = vmatpush3.msra.mxu1 %v408_v58  ;;  %v699_v17 = vpop.eup %698  ;;  %v402_v19 = vmul.f32 %v386_v13, %v338_v10  ;;  %v384_v21 = vadd.f32 1.0, %v697_v9  ;;  %v437_v53 = vpop.permute.xlu1 %436  ;;  %p716_p4 = pnand %p715_p3, %p709_p0 }
 0x103   :  { %638 = vmatprep.subr.mxu1 %v407_v62  ;;  %v701_v22 = vpop.eup %700  ;;  %v401_v24 = vmul.f32 %v385_v16, %v337_v14  ;;  %v383_v26 = vadd.f32 1.0, %v699_v17 }
 0x104   :  { %639 = vmatpush3.msra.mxu1 %v407_v62  ;;  %v703_v27 = vpop.eup %702  ;;  %v400_v29 = vmul.f32 %v384_v21, %v336_v18  ;;  %v382_v31 = vadd.f32 1.0, %v701_v22 }
 0x105   :  { %640 = vmatprep.subr.mxu1 %v406_v2  ;;  %v705_v32 = vpop.eup %704  ;;  %v399_v33 = vmul.f32 %v383_v26, %v335_v20  ;;  %v381_v34 = vadd.f32 1.0, %v703_v27 }
 0x106   :  { %641 = vmatpush3.msra.mxu1 %v406_v2  ;;  %v707_v36 = vpop.eup %706  ;;  %v398_v37 = vmul.f32 %v382_v31, %v334_v23  ;;  %v380_v38 = vadd.f32 1.0, %v705_v32 }
 0x107   :  { %642 = vmatprep.subr.mxu1 %v405_v7  ;;  %v397_v39 = vmul.f32 %v381_v34, %v333_v25  ;;  %v379_v40 = vadd.f32 1.0, %v707_v36 }
 0x108   :  { %643 = vmatpush3.msra.mxu1 %v405_v7  ;;  %v396_v30 = vmul.f32 %v380_v38, %v332_v28 }
 0x109   :  { %644 = vmatprep.subr.mxu1 %v404_v12  ;;  %v395_v45 = vmul.f32 %v379_v40, %v331_v41 }
 0x10a   :  { %645 = vmatpush3.msra.mxu1 %v404_v12 }
 0x10b   :  { %646 = vmatprep.subr.mxu1 %v403_v15 }
 0x10c   :  { %647 = vmatpush3.msra.mxu1 %v403_v15 }
 0x10d   :  { %648 = vmatprep.subr.mxu1 %v402_v19 }
 0x10e   :  { %649 = vmatpush3.msra.mxu1 %v402_v19 }
 0x10f   :  { %650 = vmatprep.subr.mxu1 %v401_v24 }
 0x110   :  { %651 = vmatpush3.msra.mxu1 %v401_v24 }
 0x111   :  { %652 = vmatprep.subr.mxu1 %v400_v29 }
 0x112   :  { %653 = vmatpush3.msra.mxu1 %v400_v29 }
 0x113   :  { %654 = vmatprep.subr.mxu1 %v399_v33 }
 0x114   :  { %655 = vmatpush3.msra.mxu1 %v399_v33 }
 0x115   :  { %656 = vmatprep.subr.mxu1 %v398_v37 }
 0x116   :  { %657 = vmatpush3.msra.mxu1 %v398_v37 }
 0x117   :  { %658 = vmatprep.subr.mxu1 %v397_v39 }
 0x118   :  { %659 = vmatpush3.msra.mxu1 %v397_v39 }
 0x119   :  { %660 = vmatprep.subr.mxu1 %v396_v30 }
 0x11a   :  { %661 = vmatpush3.msra.mxu1 %v396_v30 }
 0x11b   :  { %662 = vmatprep.subr.mxu1 %v395_v45 }
 0x11c   :  { %663 = vmatpush3.msra.mxu1 %v395_v45 }
 0x11d   :  { %665 = vmatmul.mubr.f32.vlgmr.msra.gmra.mxu1 %v412_v35 }
 0x11e   :  { %667 = vmatprep.mubr.f32.mxu1 %v413_v44 }
 0x121   :  { %668 = vmatmul.mubr.f32.gmra.mxu1 %v414_v46 }
 0x1dd   :  { %v666_v50 = vpop.f32.mrf.mxu1 }
 0x1de   :  { %v511_v47 = vadd.f32 %v666_v50, %v427_v48 }
 0x1df   :  { %v505_v51 = vpop.f32.mrf.mxu1 }
 0x1e0   :  { %525 = vst [vmem:[#allocation2 + $0x8] sm:$0xff] %v511_v47  ;;  %v506_v52 = vadd.f32 %v505_v51, %v422_v49 }
 0x1e1   :  { %v669_v54 = vpop.f32.mrf.mxu1 }
 0x1e2   :  { %524 = vst [vmem:[#allocation2] sm:$0xff] %v506_v52  ;;  %v521_v42 = vadd.f32 %v669_v54, %v437_v53 }
 0x1e3   :  { %v515_v56 = vpop.f32.mrf.mxu1 }
 0x1e4   :  { %527 = vst [vmem:[#allocation2 + $0x18] sm:$0xff] %v521_v42  ;;  %v516_v57 = vadd.f32 %v515_v56, %v432_v55 }
 0x1e6   :  { %526 = vst [vmem:[#allocation2 + $0x10] sm:$0xff] %v516_v57 }
 0x1e7   :  { %719 = shalt.err (!%p716_p4)
}
 0x1e8   :  { %s732_s27 = smov 128   ;;  %s733_s28 = smov 8  }
 0x1e9   :  { %539 = dma.vmem_to_hbm [thread:$0]  %s534_s26, 512, %s982_s5, [#allocation3], %s732_s27, %s732_s27, %s733_s28  }
 0x1ea   :  { %728 = dma.done.wait [#allocation3], 512  }
 0x1eb   :  { %729 = vsyncadd [#allocation3], 4294966784 }
 0x1ec   :  { %543 = vsyncpa [#allocation3], 1 }

</bundles_post_ra>
